<compile_context>
chip_gen: v7x
topology: tpu7x:2x2x1
jax: 0.10.0
libtpu: 0.0.40
codegen_flags: <defaults>
</compile_context>

<pallas_src>
import functools
import math

import jax
import jax.numpy as jnp
from jax.experimental import pallas as pl
from jax.experimental.pallas import tpu as pltpu

# Model hyper-parameters (small, consistent with the module's __init__).
D_IN = 32
D_OUT = 32
NUM_HEADS = 4
HEAD_DIM = D_OUT // NUM_HEADS
CONTEXT_LENGTH = 8
DROPOUT_P = 0.0  # dropout(p=0.0) == identity; matches eval / p=0 semantics.
# TODO(synk): training-mode dropout (p>0) would need pltpu.prng_* inside the kernel.


def mha_kernel(x_ref, wq_ref, wk_ref, wv_ref, wo_ref, bo_ref, o_ref, ctx_ref, *, B, T):
    xf = x_ref[...]  # (B*T, d_in), lane/sublane dense

    scale = 1.0 / math.sqrt(HEAD_DIM)
    # Full-width QKV projections on the MXU (one push each); scale folded into Q once.
    q = jnp.dot(xf, wq_ref[...], preferred_element_type=jnp.float32) * scale
    k = jnp.dot(xf, wk_ref[...], preferred_element_type=jnp.float32)
    v = jnp.dot(xf, wv_ref[...], preferred_element_type=jnp.float32)

    # (B*T, d_out) -> (B, T, d_out): leading-dim split only, minor (lane) dim untouched.
    q3 = q.reshape(B, T, D_OUT)
    k3 = k.reshape(B, T, D_OUT)
    v3 = v.reshape(B, T, D_OUT)

    # Causal mask (strict upper triangle), shared across batch and heads.
    # -inf is safe here because the diagonal is never masked (no fully-masked rows).
    row = jax.lax.broadcasted_iota(jnp.int32, (B, T, T), 1)
    col = jax.lax.broadcasted_iota(jnp.int32, (B, T, T), 2)
    causal_mask = col > row

    # Static per-head loop; score/context matmuls are batched over B via einsum.
    for h in range(NUM_HEADS):
        lo = h * HEAD_DIM
        hi = lo + HEAD_DIM
        qh = q3[:, :, lo:hi]  # (B, T, Dh)
        kh = k3[:, :, lo:hi]
        vh = v3[:, :, lo:hi]

        s = jnp.einsum("bqd,bkd->bqk", qh, kh, preferred_element_type=jnp.float32)
        s = jnp.where(causal_mask, -jnp.inf, s)

        # Numerically-stable softmax; reciprocal goes to the otherwise-idle EUP slot.
        m = jnp.max(s, axis=-1, keepdims=True)
        p = jnp.exp(s - m)
        denom = jnp.sum(p, axis=-1, keepdims=True)
        w = p * pl.reciprocal(denom, approx=True)

        # Write this head's context into its lane slice of the VMEM scratch slab
        # (replaces the old jnp.concatenate of 8-lane pieces).
        ctx_ref[:, :, lo:hi] = jnp.einsum(
            "bqk,bkd->bqd", w, vh, preferred_element_type=jnp.float32
        )

    ctx = ctx_ref[...].reshape(B * T, D_OUT)

    # Output projection (with bias); store one dense (B*T, d_out) slab.
    out = jnp.dot(ctx, wo_ref[...], preferred_element_type=jnp.float32) + bo_ref[...]
    o_ref[...] = out.astype(o_ref.dtype)


def multi_head_attention(x, wq, wk, wv, wo, bo):
    """x: (B, T, d_in); wq/wk/wv: (d_in, d_out); wo: (d_out, d_out); bo: (1, d_out)."""
    B, T, d_in = x.shape
    d_out = wq.shape[1]
    xf = x.reshape(B * T, d_in)  # collapse batch into the sublane axis

    grid_spec = pltpu.PrefetchScalarGridSpec(
        num_scalar_prefetch=0,
        grid=(1,),  # single step: whole problem fits comfortably in VMEM
        in_specs=[
            pl.BlockSpec((B * T, d_in), lambda i: (0, 0)),   # x, flattened
            pl.BlockSpec((d_in, d_out), lambda i: (0, 0)),   # W_query^T
            pl.BlockSpec((d_in, d_out), lambda i: (0, 0)),   # W_key^T
            pl.BlockSpec((d_in, d_out), lambda i: (0, 0)),   # W_value^T
            pl.BlockSpec((d_out, d_out), lambda i: (0, 0)),  # out_proj weight^T
            pl.BlockSpec((1, d_out), lambda i: (0, 0)),      # out_proj bias
        ],
        out_specs=pl.BlockSpec((B * T, d_out), lambda i: (0, 0)),
        scratch_shapes=[pltpu.VMEM((B, T, d_out), jnp.float32)],  # per-head context slab
    )

    out_flat = pl.pallas_call(
        functools.partial(mha_kernel, B=B, T=T),
        out_shape=jax.ShapeDtypeStruct((B * T, d_out), x.dtype),
        grid_spec=grid_spec,
        compiler_params=pltpu.CompilerParams(dimension_semantics=("arbitrary",)),
    )(xf, wq, wk, wv, wo, bo)
    return out_flat.reshape(B, T, d_out)


def mha_reference(x, wq, wk, wv, wo, bo):
    """Pure-JAX reference mirroring the PyTorch forward (dropout p=0)."""
    B, T, _ = x.shape
    q = x @ wq
    k = x @ wk
    v = x @ wv
    q = q.reshape(B, T, NUM_HEADS, HEAD_DIM).transpose(0, 2, 1, 3)
    k = k.reshape(B, T, NUM_HEADS, HEAD_DIM).transpose(0, 2, 1, 3)
    v = v.reshape(B, T, NUM_HEADS, HEAD_DIM).transpose(0, 2, 1, 3)
    scores = jnp.einsum("bhqd,bhkd->bhqk", q, k)
    mask = jnp.triu(jnp.ones((T, T), dtype=bool), k=1)
    scores = jnp.where(mask[None, None], -jnp.inf, scores)
    weights = jax.nn.softmax(scores / math.sqrt(HEAD_DIM), axis=-1)
    ctx = jnp.einsum("bhqk,bhkd->bhqd", weights, v)
    ctx = ctx.transpose(0, 2, 1, 3).reshape(B, T, D_OUT)
    return ctx @ wo + bo


if __name__ == "__main__":
    B, T = 2, CONTEXT_LENGTH

    key = jax.random.PRNGKey(0)
    kx, kq, kk, kv, ko, kb = jax.random.split(key, 6)

    x = jax.random.normal(kx, (B, T, D_IN), dtype=jnp.float32)

    # Deterministic parameter init (already transposed to (in, out) layout).
    wq = jax.random.normal(kq, (D_IN, D_OUT), dtype=jnp.float32) * 0.05
    wk = jax.random.normal(kk, (D_IN, D_OUT), dtype=jnp.float32) * 0.05
    wv = jax.random.normal(kv, (D_IN, D_OUT), dtype=jnp.float32) * 0.05
    wo = jax.random.normal(ko, (D_OUT, D_OUT), dtype=jnp.float32) * 0.05
    bo = jax.random.normal(kb, (1, D_OUT), dtype=jnp.float32) * 0.05

    out = multi_head_attention(x, wq, wk, wv, wo, bo)
    out = jax.block_until_ready(out)

    ref = mha_reference(x, wq, wk, wv, wo, bo)
    assert out.shape == (B, T, D_OUT), out.shape
    # Tolerance accounts for the EUP approximate reciprocal in the softmax denominator.
    assert jnp.allclose(out, ref, atol=5e-3, rtol=5e-3), float(jnp.max(jnp.abs(out - ref)))

    print("KERNEL_OK")
</pallas_src>

<mosaic_0001>
module attributes {stable_mosaic.version = 11 : i64} {
  func.func @mha_kernel(%arg0: i32, %arg1: memref<16x32xf32, #tpu.memory_space<vmem>>, %arg2: memref<32x32xf32, #tpu.memory_space<vmem>>, %arg3: memref<32x32xf32, #tpu.memory_space<vmem>>, %arg4: memref<32x32xf32, #tpu.memory_space<vmem>>, %arg5: memref<32x32xf32, #tpu.memory_space<vmem>>, %arg6: memref<1x32xf32, #tpu.memory_space<vmem>>, %arg7: memref<16x32xf32, #tpu.memory_space<vmem>>, %arg8: memref<2x8x32xf32, #tpu.memory_space<vmem>>) attributes {dimension_semantics = [#tpu.dimension_semantics<arbitrary>], iteration_bounds = array<i64: 1>, scalar_prefetch = 0 : i64, scratch_operands = 1 : i64, tpu.core_type = #tpu.core_type<tc>, window_params = [{pipeline_mode = #tpu.pipeline_mode<synchronous>, transform_indices = @transform_0, window_bounds = array<i64: 16, 32>}, {pipeline_mode = #tpu.pipeline_mode<synchronous>, transform_indices = @transform_1, window_bounds = array<i64: 32, 32>}, {pipeline_mode = #tpu.pipeline_mode<synchronous>, transform_indices = @transform_2, window_bounds = array<i64: 32, 32>}, {pipeline_mode = #tpu.pipeline_mode<synchronous>, transform_indices = @transform_3, window_bounds = array<i64: 32, 32>}, {pipeline_mode = #tpu.pipeline_mode<synchronous>, transform_indices = @transform_4, window_bounds = array<i64: 32, 32>}, {pipeline_mode = #tpu.pipeline_mode<synchronous>, transform_indices = @transform_5, window_bounds = array<i64: 1, 32>}, {pipeline_mode = #tpu.pipeline_mode<synchronous>, transform_indices = @transform_6, window_bounds = array<i64: 16, 32>}]} {
    %c0 = arith.constant 0 : index
    %c0_0 = arith.constant 0 : index
    %0 = vector.load %arg1[%c0, %c0_0] : memref<16x32xf32, #tpu.memory_space<vmem>>, vector<16x32xf32>
    %c0_1 = arith.constant 0 : index
    %c0_2 = arith.constant 0 : index
    %1 = vector.load %arg2[%c0_1, %c0_2] : memref<32x32xf32, #tpu.memory_space<vmem>>, vector<32x32xf32>
    %cst = arith.constant dense<0.000000e+00> : vector<16x32xf32>
    %2 = tpu.matmul %0, %1, %cst {dimension_numbers = #tpu.dot_dimension_numbers<[1], [0], [0], [1], [0, 0, 1, 1], [], []>} : vector<16x32xf32>, vector<32x32xf32>, vector<16x32xf32> -> vector<16x32xf32>
    %cst_3 = arith.constant 0.353553385 : f32
    %3 = vector.broadcast %cst_3 : f32 to vector<16x32xf32>
    %4 = arith.mulf %2, %3 : vector<16x32xf32>
    %c0_4 = arith.constant 0 : index
    %c0_5 = arith.constant 0 : index
    %5 = vector.load %arg3[%c0_4, %c0_5] : memref<32x32xf32, #tpu.memory_space<vmem>>, vector<32x32xf32>
    %cst_6 = arith.constant dense<0.000000e+00> : vector<16x32xf32>
    %6 = tpu.matmul %0, %5, %cst_6 {dimension_numbers = #tpu.dot_dimension_numbers<[1], [0], [0], [1], [0, 0, 1, 1], [], []>} : vector<16x32xf32>, vector<32x32xf32>, vector<16x32xf32> -> vector<16x32xf32>
    %c0_7 = arith.constant 0 : index
    %c0_8 = arith.constant 0 : index
    %7 = vector.load %arg4[%c0_7, %c0_8] : memref<32x32xf32, #tpu.memory_space<vmem>>, vector<32x32xf32>
    %cst_9 = arith.constant dense<0.000000e+00> : vector<16x32xf32>
    %8 = tpu.matmul %0, %7, %cst_9 {dimension_numbers = #tpu.dot_dimension_numbers<[1], [0], [0], [1], [0, 0, 1, 1], [], []>} : vector<16x32xf32>, vector<32x32xf32>, vector<16x32xf32> -> vector<16x32xf32>
    %9 = vector.shape_cast %4 : vector<16x32xf32> to vector<2x8x32xf32>
    %10 = vector.shape_cast %6 : vector<16x32xf32> to vector<2x8x32xf32>
    %11 = vector.shape_cast %8 : vector<16x32xf32> to vector<2x8x32xf32>
    %12 = tpu.iota {dimensions = array<i32: 1>} : vector<2x8x8xi32>
    %13 = tpu.iota {dimensions = array<i32: 2>} : vector<2x8x8xi32>
    %14 = arith.cmpi sgt, %13, %12 : vector<2x8x8xi32>
    %15 = vector.extract_strided_slice %9 {offsets = [0, 0, 0], sizes = [2, 8, 8], strides = [1, 1, 1]} : vector<2x8x32xf32> to vector<2x8x8xf32>
    %16 = vector.extract_strided_slice %10 {offsets = [0, 0, 0], sizes = [2, 8, 8], strides = [1, 1, 1]} : vector<2x8x32xf32> to vector<2x8x8xf32>
    %17 = vector.extract_strided_slice %11 {offsets = [0, 0, 0], sizes = [2, 8, 8], strides = [1, 1, 1]} : vector<2x8x32xf32> to vector<2x8x8xf32>
    "tpu.trace_start"() <{level = 10 : i32, message = "bqd,bkd->bqk"}> : () -> ()
    %cst_10 = arith.constant dense<0.000000e+00> : vector<2x8x8xf32>
    %18 = tpu.matmul %15, %16, %cst_10 {dimension_numbers = #tpu.dot_dimension_numbers<[2], [2], [1], [1], [0, 0, 0, 1, 1, 1], [0], [0]>} : vector<2x8x8xf32>, vector<2x8x8xf32>, vector<2x8x8xf32> -> vector<2x8x8xf32>
    %cst_11 = arith.constant 0xFF800000 : f32
    "tpu.trace_stop"() : () -> ()
    %19 = vector.broadcast %cst_11 : f32 to vector<2x8x8xf32>
    %20 = arith.select %14, %19, %18 : vector<2x8x8xi1>, vector<2x8x8xf32>
    %cst_12 = arith.constant dense<0xFF800000> : vector<2x8xf32>
    %21 = vector.multi_reduction <maximumf>, %20, %cst_12 [2] : vector<2x8x8xf32> to vector<2x8xf32>
    %22 = vector.shape_cast %21 : vector<2x8xf32> to vector<2x8x1xf32>
    %23 = vector.broadcast %22 : vector<2x8x1xf32> to vector<2x8x8xf32>
    %24 = arith.subf %20, %23 : vector<2x8x8xf32>
    %25 = math.exp %24 : vector<2x8x8xf32>
    %cst_13 = arith.constant dense<0.000000e+00> : vector<2x8xf32>
    %26 = vector.multi_reduction <add>, %25, %cst_13 [2] : vector<2x8x8xf32> to vector<2x8xf32>
    %27 = vector.shape_cast %26 : vector<2x8xf32> to vector<2x8x1xf32>
    %28 = tpu.reciprocal %27 {approx = true} : vector<2x8x1xf32> -> vector<2x8x1xf32>
    %29 = vector.broadcast %28 : vector<2x8x1xf32> to vector<2x8x8xf32>
    %30 = arith.mulf %25, %29 : vector<2x8x8xf32>
    "tpu.trace_start"() <{level = 10 : i32, message = "bqk,bkd->bqd"}> : () -> ()
    %cst_14 = arith.constant dense<0.000000e+00> : vector<2x8x8xf32>
    %31 = tpu.matmul %30, %17, %cst_14 {dimension_numbers = #tpu.dot_dimension_numbers<[2], [1], [1], [2], [0, 0, 0, 1, 1, 2], [0], [0]>} : vector<2x8x8xf32>, vector<2x8x8xf32>, vector<2x8x8xf32> -> vector<2x8x8xf32>
    "tpu.trace_stop"() : () -> ()
    %c0_15 = arith.constant 0 : index
    %c0_16 = arith.constant 0 : index
    %c0_17 = arith.constant 0 : index
    %32 = vector.load %arg8[%c0_15, %c0_16, %c0_17] : memref<2x8x32xf32, #tpu.memory_space<vmem>>, vector<2x8x8xf32>
    tpu.vector_store %arg8[%c0_15, %c0_16, %c0_17], %31 {strides = array<i32>} : memref<2x8x32xf32, #tpu.memory_space<vmem>>, vector<2x8x8xf32>,
    %33 = vector.extract_strided_slice %9 {offsets = [0, 0, 8], sizes = [2, 8, 8], strides = [1, 1, 1]} : vector<2x8x32xf32> to vector<2x8x8xf32>
    %34 = vector.extract_strided_slice %10 {offsets = [0, 0, 8], sizes = [2, 8, 8], strides = [1, 1, 1]} : vector<2x8x32xf32> to vector<2x8x8xf32>
    %35 = vector.extract_strided_slice %11 {offsets = [0, 0, 8], sizes = [2, 8, 8], strides = [1, 1, 1]} : vector<2x8x32xf32> to vector<2x8x8xf32>
    "tpu.trace_start"() <{level = 10 : i32, message = "bqd,bkd->bqk"}> : () -> ()
    %cst_18 = arith.constant dense<0.000000e+00> : vector<2x8x8xf32>
    %36 = tpu.matmul %33, %34, %cst_18 {dimension_numbers = #tpu.dot_dimension_numbers<[2], [2], [1], [1], [0, 0, 0, 1, 1, 1], [0], [0]>} : vector<2x8x8xf32>, vector<2x8x8xf32>, vector<2x8x8xf32> -> vector<2x8x8xf32>
    %cst_19 = arith.constant 0xFF800000 : f32
    "tpu.trace_stop"() : () -> ()
    %37 = vector.broadcast %cst_19 : f32 to vector<2x8x8xf32>
    %38 = arith.select %14, %37, %36 : vector<2x8x8xi1>, vector<2x8x8xf32>
    %cst_20 = arith.constant dense<0xFF800000> : vector<2x8xf32>
    %39 = vector.multi_reduction <maximumf>, %38, %cst_20 [2] : vector<2x8x8xf32> to vector<2x8xf32>
    %40 = vector.shape_cast %39 : vector<2x8xf32> to vector<2x8x1xf32>
    %41 = vector.broadcast %40 : vector<2x8x1xf32> to vector<2x8x8xf32>
    %42 = arith.subf %38, %41 : vector<2x8x8xf32>
    %43 = math.exp %42 : vector<2x8x8xf32>
    %cst_21 = arith.constant dense<0.000000e+00> : vector<2x8xf32>
    %44 = vector.multi_reduction <add>, %43, %cst_21 [2] : vector<2x8x8xf32> to vector<2x8xf32>
    %45 = vector.shape_cast %44 : vector<2x8xf32> to vector<2x8x1xf32>
    %46 = tpu.reciprocal %45 {approx = true} : vector<2x8x1xf32> -> vector<2x8x1xf32>
    %47 = vector.broadcast %46 : vector<2x8x1xf32> to vector<2x8x8xf32>
    %48 = arith.mulf %43, %47 : vector<2x8x8xf32>
    "tpu.trace_start"() <{level = 10 : i32, message = "bqk,bkd->bqd"}> : () -> ()
    %cst_22 = arith.constant dense<0.000000e+00> : vector<2x8x8xf32>
    %49 = tpu.matmul %48, %35, %cst_22 {dimension_numbers = #tpu.dot_dimension_numbers<[2], [1], [1], [2], [0, 0, 0, 1, 1, 2], [0], [0]>} : vector<2x8x8xf32>, vector<2x8x8xf32>, vector<2x8x8xf32> -> vector<2x8x8xf32>
    "tpu.trace_stop"() : () -> ()
    %c0_23 = arith.constant 0 : index
    %c0_24 = arith.constant 0 : index
    %c8 = arith.constant 8 : index
    %50 = vector.load %arg8[%c0_23, %c0_24, %c8] : memref<2x8x32xf32, #tpu.memory_space<vmem>>, vector<2x8x8xf32>
    tpu.vector_store %arg8[%c0_23, %c0_24, %c8], %49 {strides = array<i32>} : memref<2x8x32xf32, #tpu.memory_space<vmem>>, vector<2x8x8xf32>,
    %51 = vector.extract_strided_slice %9 {offsets = [0, 0, 16], sizes = [2, 8, 8], strides = [1, 1, 1]} : vector<2x8x32xf32> to vector<2x8x8xf32>
    %52 = vector.extract_strided_slice %10 {offsets = [0, 0, 16], sizes = [2, 8, 8], strides = [1, 1, 1]} : vector<2x8x32xf32> to vector<2x8x8xf32>
    %53 = vector.extract_strided_slice %11 {offsets = [0, 0, 16], sizes = [2, 8, 8], strides = [1, 1, 1]} : vector<2x8x32xf32> to vector<2x8x8xf32>
    "tpu.trace_start"() <{level = 10 : i32, message = "bqd,bkd->bqk"}> : () -> ()
    %cst_25 = arith.constant dense<0.000000e+00> : vector<2x8x8xf32>
    %54 = tpu.matmul %51, %52, %cst_25 {dimension_numbers = #tpu.dot_dimension_numbers<[2], [2], [1], [1], [0, 0, 0, 1, 1, 1], [0], [0]>} : vector<2x8x8xf32>, vector<2x8x8xf32>, vector<2x8x8xf32> -> vector<2x8x8xf32>
    %cst_26 = arith.constant 0xFF800000 : f32
    "tpu.trace_stop"() : () -> ()
    %55 = vector.broadcast %cst_26 : f32 to vector<2x8x8xf32>
    %56 = arith.select %14, %55, %54 : vector<2x8x8xi1>, vector<2x8x8xf32>
    %cst_27 = arith.constant dense<0xFF800000> : vector<2x8xf32>
    %57 = vector.multi_reduction <maximumf>, %56, %cst_27 [2] : vector<2x8x8xf32> to vector<2x8xf32>
    %58 = vector.shape_cast %57 : vector<2x8xf32> to vector<2x8x1xf32>
    %59 = vector.broadcast %58 : vector<2x8x1xf32> to vector<2x8x8xf32>
    %60 = arith.subf %56, %59 : vector<2x8x8xf32>
    %61 = math.exp %60 : vector<2x8x8xf32>
    %cst_28 = arith.constant dense<0.000000e+00> : vector<2x8xf32>
    %62 = vector.multi_reduction <add>, %61, %cst_28 [2] : vector<2x8x8xf32> to vector<2x8xf32>
    %63 = vector.shape_cast %62 : vector<2x8xf32> to vector<2x8x1xf32>
    %64 = tpu.reciprocal %63 {approx = true} : vector<2x8x1xf32> -> vector<2x8x1xf32>
    %65 = vector.broadcast %64 : vector<2x8x1xf32> to vector<2x8x8xf32>
    %66 = arith.mulf %61, %65 : vector<2x8x8xf32>
    "tpu.trace_start"() <{level = 10 : i32, message = "bqk,bkd->bqd"}> : () -> ()
    %cst_29 = arith.constant dense<0.000000e+00> : vector<2x8x8xf32>
    %67 = tpu.matmul %66, %53, %cst_29 {dimension_numbers = #tpu.dot_dimension_numbers<[2], [1], [1], [2], [0, 0, 0, 1, 1, 2], [0], [0]>} : vector<2x8x8xf32>, vector<2x8x8xf32>, vector<2x8x8xf32> -> vector<2x8x8xf32>
    "tpu.trace_stop"() : () -> ()
    %c0_30 = arith.constant 0 : index
    %c0_31 = arith.constant 0 : index
    %c16 = arith.constant 16 : index
    %68 = vector.load %arg8[%c0_30, %c0_31, %c16] : memref<2x8x32xf32, #tpu.memory_space<vmem>>, vector<2x8x8xf32>
    tpu.vector_store %arg8[%c0_30, %c0_31, %c16], %67 {strides = array<i32>} : memref<2x8x32xf32, #tpu.memory_space<vmem>>, vector<2x8x8xf32>,
    %69 = vector.extract_strided_slice %9 {offsets = [0, 0, 24], sizes = [2, 8, 8], strides = [1, 1, 1]} : vector<2x8x32xf32> to vector<2x8x8xf32>
    %70 = vector.extract_strided_slice %10 {offsets = [0, 0, 24], sizes = [2, 8, 8], strides = [1, 1, 1]} : vector<2x8x32xf32> to vector<2x8x8xf32>
    %71 = vector.extract_strided_slice %11 {offsets = [0, 0, 24], sizes = [2, 8, 8], strides = [1, 1, 1]} : vector<2x8x32xf32> to vector<2x8x8xf32>
    "tpu.trace_start"() <{level = 10 : i32, message = "bqd,bkd->bqk"}> : () -> ()
    %cst_32 = arith.constant dense<0.000000e+00> : vector<2x8x8xf32>
    %72 = tpu.matmul %69, %70, %cst_32 {dimension_numbers = #tpu.dot_dimension_numbers<[2], [2], [1], [1], [0, 0, 0, 1, 1, 1], [0], [0]>} : vector<2x8x8xf32>, vector<2x8x8xf32>, vector<2x8x8xf32> -> vector<2x8x8xf32>
    %cst_33 = arith.constant 0xFF800000 : f32
    "tpu.trace_stop"() : () -> ()
    %73 = vector.broadcast %cst_33 : f32 to vector<2x8x8xf32>
    %74 = arith.select %14, %73, %72 : vector<2x8x8xi1>, vector<2x8x8xf32>
    %cst_34 = arith.constant dense<0xFF800000> : vector<2x8xf32>
    %75 = vector.multi_reduction <maximumf>, %74, %cst_34 [2] : vector<2x8x8xf32> to vector<2x8xf32>
    %76 = vector.shape_cast %75 : vector<2x8xf32> to vector<2x8x1xf32>
    %77 = vector.broadcast %76 : vector<2x8x1xf32> to vector<2x8x8xf32>
    %78 = arith.subf %74, %77 : vector<2x8x8xf32>
    %79 = math.exp %78 : vector<2x8x8xf32>
    %cst_35 = arith.constant dense<0.000000e+00> : vector<2x8xf32>
    %80 = vector.multi_reduction <add>, %79, %cst_35 [2] : vector<2x8x8xf32> to vector<2x8xf32>
    %81 = vector.shape_cast %80 : vector<2x8xf32> to vector<2x8x1xf32>
    %82 = tpu.reciprocal %81 {approx = true} : vector<2x8x1xf32> -> vector<2x8x1xf32>
    %83 = vector.broadcast %82 : vector<2x8x1xf32> to vector<2x8x8xf32>
    %84 = arith.mulf %79, %83 : vector<2x8x8xf32>
    "tpu.trace_start"() <{level = 10 : i32, message = "bqk,bkd->bqd"}> : () -> ()
    %cst_36 = arith.constant dense<0.000000e+00> : vector<2x8x8xf32>
    %85 = tpu.matmul %84, %71, %cst_36 {dimension_numbers = #tpu.dot_dimension_numbers<[2], [1], [1], [2], [0, 0, 0, 1, 1, 2], [0], [0]>} : vector<2x8x8xf32>, vector<2x8x8xf32>, vector<2x8x8xf32> -> vector<2x8x8xf32>
    "tpu.trace_stop"() : () -> ()
    %c0_37 = arith.constant 0 : index
    %c0_38 = arith.constant 0 : index
    %c24 = arith.constant 24 : index
    %86 = vector.load %arg8[%c0_37, %c0_38, %c24] : memref<2x8x32xf32, #tpu.memory_space<vmem>>, vector<2x8x8xf32>
    tpu.vector_store %arg8[%c0_37, %c0_38, %c24], %85 {strides = array<i32>} : memref<2x8x32xf32, #tpu.memory_space<vmem>>, vector<2x8x8xf32>,
    %c0_39 = arith.constant 0 : index
    %c0_40 = arith.constant 0 : index
    %c0_41 = arith.constant 0 : index
    %87 = vector.load %arg8[%c0_39, %c0_40, %c0_41] : memref<2x8x32xf32, #tpu.memory_space<vmem>>, vector<2x8x32xf32>
    %88 = vector.shape_cast %87 : vector<2x8x32xf32> to vector<16x32xf32>
    %c0_42 = arith.constant 0 : index
    %c0_43 = arith.constant 0 : index
    %89 = vector.load %arg5[%c0_42, %c0_43] : memref<32x32xf32, #tpu.memory_space<vmem>>, vector<32x32xf32>
    %cst_44 = arith.constant dense<0.000000e+00> : vector<16x32xf32>
    %90 = tpu.matmul %88, %89, %cst_44 {dimension_numbers = #tpu.dot_dimension_numbers<[1], [0], [0], [1], [0, 0, 1, 1], [], []>} : vector<16x32xf32>, vector<32x32xf32>, vector<16x32xf32> -> vector<16x32xf32>
    %c0_45 = arith.constant 0 : index
    %c0_46 = arith.constant 0 : index
    %91 = vector.load %arg6[%c0_45, %c0_46] : memref<1x32xf32, #tpu.memory_space<vmem>>, vector<1x32xf32>
    %92 = vector.broadcast %91 : vector<1x32xf32> to vector<16x32xf32>
    %93 = arith.addf %90, %92 : vector<16x32xf32>
    %c0_47 = arith.constant 0 : index
    %c0_48 = arith.constant 0 : index
    %94 = vector.load %arg7[%c0_47, %c0_48] : memref<16x32xf32, #tpu.memory_space<vmem>>, vector<16x32xf32>
    tpu.vector_store %arg7[%c0_47, %c0_48], %93 {strides = array<i32>} : memref<16x32xf32, #tpu.memory_space<vmem>>, vector<16x32xf32>,
    return
  }
  func.func @transform_0(%arg0: i32) -> (i32, i32) {
    %c0_i32 = arith.constant 0 : i32
    %c0_i32_0 = arith.constant 0 : i32
    %c0_i32_1 = arith.constant 0 : i32
    return %c0_i32, %c0_i32_0 : i32, i32
  }
  func.func @transform_1(%arg0: i32) -> (i32, i32) {
    %c0_i32 = arith.constant 0 : i32
    %c0_i32_0 = arith.constant 0 : i32
    %c0_i32_1 = arith.constant 0 : i32
    return %c0_i32, %c0_i32_0 : i32, i32
  }
  func.func @transform_2(%arg0: i32) -> (i32, i32) {
    %c0_i32 = arith.constant 0 : i32
    %c0_i32_0 = arith.constant 0 : i32
    %c0_i32_1 = arith.constant 0 : i32
    return %c0_i32, %c0_i32_0 : i32, i32
  }
  func.func @transform_3(%arg0: i32) -> (i32, i32) {
    %c0_i32 = arith.constant 0 : i32
    %c0_i32_0 = arith.constant 0 : i32
    %c0_i32_1 = arith.constant 0 : i32
    return %c0_i32, %c0_i32_0 : i32, i32
  }
  func.func @transform_4(%arg0: i32) -> (i32, i32) {
    %c0_i32 = arith.constant 0 : i32
    %c0_i32_0 = arith.constant 0 : i32
    %c0_i32_1 = arith.constant 0 : i32
    return %c0_i32, %c0_i32_0 : i32, i32
  }
  func.func @transform_5(%arg0: i32) -> (i32, i32) {
    %c0_i32 = arith.constant 0 : i32
    %c0_i32_0 = arith.constant 0 : i32
    %c0_i32_1 = arith.constant 0 : i32
    return %c0_i32, %c0_i32_0 : i32, i32
  }
  func.func @transform_6(%arg0: i32) -> (i32, i32) {
    %c0_i32 = arith.constant 0 : i32
    %c0_i32_0 = arith.constant 0 : i32
    %c0_i32_1 = arith.constant 0 : i32
    return %c0_i32, %c0_i32_0 : i32, i32
  }
}

</mosaic_0001>

<bundles_post_ra>
// kernel: tpu_custom_call.1
= control target key start
LH: loop header
LB: loop body
LE: loop exit
PB: predicated region body
PF: predicated region fallthrough
CT: control target
= control target key end

     0   :  { %11 = vsyncpa [#allocation4], 0  ;;  %s2589_s0 = inlined_call_operand.hbm [shape: f32[16,32], index: 0, kind: input, shape index: {}]   ;;  %s2590_s1 = inlined_call_operand.hbm [shape: f32[32,32], index: 1, kind: input, shape index: {}]   ;;  %s2591_s2 = inlined_call_operand.hbm [shape: f32[32,32], index: 2, kind: input, shape index: {}]   ;;  %s2592_s3 = inlined_call_operand.hbm [shape: f32[32,32], index: 3, kind: input, shape index: {}]   ;;  %s2593_s4 = inlined_call_operand.hbm [shape: f32[32,32], index: 4, kind: input, shape index: {}]   ;;  %s2594_s5 = inlined_call_operand.vmem [shape: f32[1,32], index: 5, kind: input, shape index: {}]   ;;  %s2595_s6 = inlined_call_operand.hbm [shape: f32[16,32], index: 6, kind: output, shape index: {}]  }
   0x1   :  { %12 = vsyncpa [#allocation7], 0 }
   0x2   :  { %13 = vsyncpa [#allocation10], 0 }
   0x3   :  { %14 = vsyncpa [#allocation5], 0  ;;  %s2248_s21 = smov [#allocation6]   ;;  %s2249_s23 = smov [#allocation9]  }
   0x4   :  { %s32_s22 = sshll.u32 %s2248_s21, 4  ;;  %s56_s24 = sshll.u32 %s2249_s23, 4  ;;  %s33_s22 = int_to_ptr.vmem [resolvable:$true] %s32_s22  ;;  %s2298_s24 = int_to_ptr.vmem [resolvable:$true] %s56_s24 }
   0x5   :  { %s2108_s27 = scalar_lea.hbm %s2590_s1, 512 }
   0x6   :  { %p2109_p0 = scmp.ne.s32.totalorder %s2590_s1, %s2108_s27  ;;  %p2112_p1 = scmp.lt.u32.totalorder %s2108_s27, %s2590_s1 }
   0x8   :  { %p2114_p2 = pnand %p2112_p1, %p2109_p0 }
   0xa   :  { %2117 = shalt.err (!%p2114_p2)
}
   0xb   :  { %s2118_s8 = scalar_lea.vmem %s33_s22, 512  ;;  %p2123_p4 = scmp.lt.s32.totalorder %s33_s22, %s33_s22 }
   0xc   :  { %p2119_p3 = scmp.ne.s32.totalorder %s33_s22, %s2118_s8  ;;  %p2124_p5 = scmp.lt.s32.totalorder %s2118_s8, %s2118_s8 }
   0xe   :  { %p2125_p6 = por %p2124_p5, %p2123_p4 }
  0x10   :  { %p2126_p7 = pnand %p2125_p6, %p2119_p3 }
  0x12   :  { %2129 = shalt.err (!%p2126_p7)
}
  0x13   :  { %s2250_s9 = smov 128   ;;  %s2251_s10 = smov 8  }
  0x14   :  { %38 = dma.hbm_to_vmem [thread:$0]  %s2590_s1, 512, %s33_s22, [#allocation7], %s2250_s9, %s2250_s9, %s2251_s10  }
  0x15   :  { %s2130_s15 = scalar_lea.hbm %s2592_s3, 512 }
  0x16   :  { %p2131_p8 = scmp.ne.s32.totalorder %s2592_s3, %s2130_s15  ;;  %p2134_p9 = scmp.lt.u32.totalorder %s2130_s15, %s2592_s3 }
  0x18   :  { %p2136_p10 = pnand %p2134_p9, %p2131_p8 }
  0x1a   :  { %2139 = shalt.err (!%p2136_p10)
}
  0x1b   :  { %s2140_s20 = scalar_lea.vmem %s2298_s24, 512  ;;  %p2145_p12 = scmp.lt.s32.totalorder %s2298_s24, %s2298_s24 }
  0x1c   :  { %p2141_p11 = scmp.ne.s32.totalorder %s2298_s24, %s2140_s20  ;;  %p2146_p13 = scmp.lt.s32.totalorder %s2140_s20, %s2140_s20 }
  0x1e   :  { %p2147_p0 = por %p2146_p13, %p2145_p12 }
  0x20   :  { %p2148_p1 = pnand %p2147_p0, %p2141_p11 }
  0x22   :  { %2151 = shalt.err (!%p2148_p1)
}
  0x23   :  { %62 = dma.hbm_to_vmem [thread:$0]  %s2592_s3, 512, %s2298_s24, [#allocation10], %s2250_s9, %s2250_s9, %s2251_s10  }
  0x24   :  { %s2252_s22 = smov [#allocation3]   ;;  %s2253_s25 = smov [#allocation8]  }
  0x25   :  { %s20_s23 = sshll.u32 %s2252_s22, 4  ;;  %s44_s26 = sshll.u32 %s2253_s25, 4  ;;  %s21_s23 = int_to_ptr.vmem [resolvable:$true] %s20_s23  ;;  %s2335_s26 = int_to_ptr.vmem [resolvable:$true] %s44_s26 }
  0x26   :  { %s2152_s29 = scalar_lea.hbm %s2589_s0, 256 }
  0x27   :  { %p2153_p2 = scmp.ne.s32.totalorder %s2589_s0, %s2152_s29  ;;  %p2156_p3 = scmp.lt.u32.totalorder %s2152_s29, %s2589_s0 }
  0x29   :  { %p2158_p4 = pnand %p2156_p3, %p2153_p2 }
  0x2b   :  { %2161 = shalt.err (!%p2158_p4)
}
  0x2c   :  { %s2162_s3 = scalar_lea.vmem %s21_s23, 256  ;;  %p2167_p6 = scmp.lt.s32.totalorder %s21_s23, %s21_s23 }
  0x2d   :  { %p2163_p5 = scmp.ne.s32.totalorder %s21_s23, %s2162_s3  ;;  %p2168_p7 = scmp.lt.s32.totalorder %s2162_s3, %s2162_s3 }
  0x2f   :  { %p2169_p8 = por %p2168_p7, %p2167_p6 }
  0x31   :  { %p2170_p9 = pnand %p2169_p8, %p2163_p5 }
  0x33   :  { %2173 = shalt.err (!%p2170_p9)
}
  0x34   :  { %26 = dma.hbm_to_vmem [thread:$0]  %s2589_s0, 256, %s21_s23, [#allocation4], %s2250_s9, %s2250_s9, %s2251_s10  }
  0x35   :  { %s2174_s15 = scalar_lea.hbm %s2591_s2, 512 }
  0x36   :  { %p2175_p10 = scmp.ne.s32.totalorder %s2591_s2, %s2174_s15  ;;  %p2178_p11 = scmp.lt.u32.totalorder %s2174_s15, %s2591_s2 }
  0x38   :  { %p2180_p12 = pnand %p2178_p11, %p2175_p10 }
  0x3a   :  { %2183 = shalt.err (!%p2180_p12)
}
  0x3b   :  { %s2184_s20 = scalar_lea.vmem %s2335_s26, 512  ;;  %p2189_p0 = scmp.lt.s32.totalorder %s2335_s26, %s2335_s26 }
  0x3c   :  { %p2185_p13 = scmp.ne.s32.totalorder %s2335_s26, %s2184_s20  ;;  %p2190_p1 = scmp.lt.s32.totalorder %s2184_s20, %s2184_s20 }
  0x3e   :  { %p2191_p2 = por %p2190_p1, %p2189_p0 }
  0x40   :  { %p2192_p3 = pnand %p2191_p2, %p2185_p13 }
  0x42   :  { %2195 = shalt.err (!%p2192_p3)
}
  0x43   :  { %50 = dma.hbm_to_vmem [thread:$0]  %s2591_s2, 512, %s2335_s26, [#allocation7], %s2250_s9, %s2250_s9, %s2251_s10  }
  0x44   :  { %s2254_s21 = smov [#allocation11]   ;;  %s2196_s27 = scalar_lea.hbm %s2593_s4, 512 }
  0x45   :  { %s68_s22 = sshll.u32 %s2254_s21, 4  ;;  %p2197_p4 = scmp.ne.s32.totalorder %s2593_s4, %s2196_s27  ;;  %s69_s22 = int_to_ptr.vmem [resolvable:$true] %s68_s22 }
  0x46   :  { %p2200_p5 = scmp.lt.u32.totalorder %s2196_s27, %s2593_s4 }
  0x48   :  { %p2202_p6 = pnand %p2200_p5, %p2197_p4 }
  0x4a   :  { %2205 = shalt.err (!%p2202_p6)
}
  0x4b   :  { %s2206_s8 = scalar_lea.vmem %s69_s22, 512  ;;  %p2211_p8 = scmp.lt.s32.totalorder %s69_s22, %s69_s22 }
  0x4c   :  { %p2207_p7 = scmp.ne.s32.totalorder %s69_s22, %s2206_s8  ;;  %p2212_p9 = scmp.lt.s32.totalorder %s2206_s8, %s2206_s8 }
  0x4e   :  { %p2213_p10 = por %p2212_p9, %p2211_p8 }
  0x50   :  { %p2214_p11 = pnand %p2213_p10, %p2207_p7 }
  0x52   :  { %2217 = shalt.err (!%p2214_p11)
}
  0x53   :  { %74 = dma.hbm_to_vmem [thread:$0]  %s2593_s4, 512, %s69_s22, [#allocation10], %s2250_s9, %s2250_s9, %s2251_s10  }
  0x54   :  { %2240 = dma.done.wait [#allocation4], 256  }
  0x55   :  { %2241 = vsyncadd [#allocation4], 4294967040 }
  0x56   :  { %2242 = dma.done.wait [#allocation7], 1024  }
  0x57   :  { %2243 = vsyncadd [#allocation7], 4294966272 }
  0x58   :  { %2244 = dma.done.wait [#allocation10], 1024  }
  0x59   :  { %2245 = vsyncadd [#allocation10], 4294966272  ;;  %v94_v0 = vld [vmem:[#allocation6] sm:$0xff]  ;;  %v95_v1 = vld [vmem:[#allocation6 + $0x8] sm:$0xff]  ;;  %vm98_vm0 = vcmask 261120   ;;  %v2255_v14 = vmov 0.0   ;;  %v340_v27 = vlaneseq }
  0x5a   :  { %v182_v2 = vld [vmem:[#allocation8] sm:$0xff]  ;;  %v2029_v3 = vpack.c.bf16 %v95_v1, %v94_v0  ;;  %v183_v4 = vld [vmem:[#allocation8 + $0x8] sm:$0xff]  ;;  %v96_v5 = vld [vmem:[#allocation6 + $0x10] sm:$0xff]  ;;  %vm2256_vm1 = vmmov 0   ;;  %vm345_vm2 = vcmask 64512   ;;  %s2257_s4 = smov 120  }
  0x5b   :  { %v97_v6 = vld [vmem:[#allocation6 + $0x18] sm:$0xff]  ;;  %v2037_v7 = vpack.c.bf16 %v183_v4, %v182_v2  ;;  %v184_v9 = vld [vmem:[#allocation8 + $0x10] sm:$0xff]  ;;  %v261_v21 = vld [vmem:[#allocation9] sm:$0xff]  ;;  %v341_v28 = vshrl.u32 %v340_v27, 7  ;;  %v343_v29 = vand.u32 127, %v340_v27  ;;  %s2258_s11 = smov 112  }
  0x5c   :  { %v2033_v8 = vpack.c.bf16 %v97_v6, %v96_v5  ;;  %v185_v10 = vld [vmem:[#allocation8 + $0x18] sm:$0xff]  ;;  %v92_v11 = vld [vmem:[#allocation3] sm:$0xff]  ;;  %2030 = vmatprep.subr.bf16.mxu0 %v2029_v3  ;;  %v262_v22 = vld [vmem:[#allocation9 + $0x8] sm:$0xff]  ;;  %s2259_s3 = smov 104   ;;  %s2260_s24 = smov 16   ;;  %vm1012_vm4 = vcmask 130112  }
  0x5d   :  { %v2041_v12 = vpack.c.bf16 %v185_v10, %v184_v9  ;;  %1913 = vmatprep.mubr.msk.f32.mxu0 %vm98_vm0, %v92_v11  ;;  %2038 = vmatprep.subr.bf16.mxu1 %v2037_v7  ;;  %v93_v13 = vld [vmem:[#allocation3 + $0x8] sm:$0xff]  ;;  %v263_v23 = vld [vmem:[#allocation9 + $0x10] sm:$0xff]  ;;  %v2045_v24 = vpack.c.bf16 %v262_v22, %v261_v21  ;;  %vm2425_vm3 = vcmp.gt.s32.totalorder %v343_v29, %v341_v28  ;;  %vm1355_vm5 = vcmask 195712   ;;  %s2261_s12 = smov 24   ;;  %s2262_s15 = smov [#allocation12]  }
  0x5e   :  { %2032 = vmatpush3.bf16.msra.mxu0 %v2029_v3  ;;  %2040 = vmatpush3.bf16.msra.mxu1 %v2037_v7  ;;  %v264_v25 = vld [vmem:[#allocation9 + $0x18] sm:$0xff]  ;;  %vm1698_vm6 = vcmask 261312   ;;  %s1802_s16 = sshll.u32 %s2262_s15, 4  ;;  %s1803_s16 = int_to_ptr.vmem [resolvable:$true] %s1802_s16 }
  0x5f   :  { %2034 = vmatprep.subr.bf16.mxu0 %v2033_v8  ;;  %2042 = vmatprep.subr.bf16.mxu1 %v2041_v12  ;;  %v2049_v26 = vpack.c.bf16 %v264_v25, %v263_v23  ;;  %s2218_s17 = scalar_lea.vmem %s1803_s16, 256  ;;  %p2223_p13 = scmp.lt.s32.totalorder %s1803_s16, %s1803_s16 }
  0x60   :  { %1924 = vmatprep.mubr.msk.f32.mxu1 %vm98_vm0, %v92_v11  ;;  %p2219_p12 = scmp.ne.s32.totalorder %s1803_s16, %s2218_s17  ;;  %p2224_p0 = scmp.lt.s32.totalorder %s2218_s17, %s2218_s17 }
  0x62   :  { %2036 = vmatpush3.bf16.msra.mxu0 %v2033_v8  ;;  %2044 = vmatpush3.bf16.msra.mxu1 %v2041_v12  ;;  %p2225_p1 = por %p2224_p0, %p2223_p13 }
  0x63   :  { %1938 = vmatprep.subr.mxu1 %v2255_v14  ;;  %2046 = vmatprep.subr.bf16.mxu0 %v2045_v24 }
  0x64   :  { %p2226_p2 = pnand %p2225_p1, %p2219_p12 }
  0x65   :  { %1914 = vmatmul.mubr.msk.f32.vlgmr.msra.gmra.mrb[0].mxu0 %vm98_vm0, %v93_v13  ;;  %1925 = vmatmul.mubr.msk.f32.vlgmr.msra.gmra.mrb[0].mxu1 %vm98_vm0, %v93_v13 }
  0x66   :  { %1935 = vmatprep.mubr.msk.f32.mxu0 %vm98_vm0, %v92_v11  ;;  %1940 = vmatprep.mubr.msk.f32.mxu1 %vm2256_vm1, %v2255_v14 }
  0x67   :  { %2048 = vmatpush3.bf16.msra.mxu0 %v2045_v24 }
  0x68   :  { %2050 = vmatprep.subr.bf16.mxu0 %v2049_v26 }
  0x6b   :  { %2052 = vmatpush3.bf16.msra.mxu0 %v2049_v26 }
  0x6c   :  { %1958 = vmatprep.subr.mxu0 %v2255_v14 }
  0x6e   :  { %1936 = vmatmul.mubr.msk.f32.vlgmr.msra.gmra.mrb[2].mxu0 %vm98_vm0, %v93_v13 }
  0x6f   :  { %1960 = vmatprep.mubr.msk.f32.mxu0 %vm2256_vm1, %v2255_v14 }
 0x138   :  { %v1915_v15 = vpop.f32.mrb[0].mxu0  ;;  %v2395_v16 = vpop.f32.mrb[0].mxu1 }
 0x139   :  { %v171_v17 = vpop.f32.mrb[1].mxu0  ;;  %750 = vrot.lane.b32.xlu1 %v2395_v16, %s2257_s4  ;;  %v2401_v19 = vpop.f32.mrb[1].mxu1  ;;  %v2414_v20 = vmul.f32 0.35355338, %v1915_v15 }
 0x13a   :  { %v2399_v18 = vmul.f32 0.35355338, %v171_v17  ;;  %1939 = vmatpush3.xpose.msk.msra.mxu1 %vm345_vm2, %v2401_v19 }
 0x13b   :  { %1943 = vmatprep.subr.mxu1 %v2255_v14 }
 0x13d   :  { %670 = vrot.lane.b32.xlu1 %v2399_v18, %s2257_s4  ;;  %1941 = vmatmul.mubr.msk.f32.vlgmr.msra.gmra.mrb[2].mxu1 %vm345_vm2, %v2399_v18 }
 0x13e   :  { %1944 = vmatpush3.xpose.msk.msra.mxu1 %vm345_vm2, %v2395_v16  ;;  %1945 = vmatprep.mubr.msk.f32.mxu1 %vm2256_vm1, %v2255_v14 }
 0x13f   :  { %1948 = vmatprep.subr.mxu1 %v2255_v14 }
 0x141   :  { %1946 = vmatmul.mubr.msk.f32.vlgmr.msra.gmra.mrb[4].mxu1 %vm345_vm2, %v2414_v20  ;;  %v2446_v52 = vpop.f32.mrb[2].mxu0 }
 0x142   :  { %1950 = vmatprep.mubr.msk.f32.mxu1 %vm2256_vm1, %v2255_v14  ;;  %v2448_v53 = vpop.f32.mrb[3].mxu0 }
 0x143   :  { %1949 = vmatpush3.msra.mxu1 %v2448_v53 }
 0x144   :  { %1953 = vmatprep.subr.mxu1 %v2255_v14 }
 0x1ab   :  { %v751_v43 = vpop.permute.xlu1 %750 }
 0x1af   :  { %v671_v47 = vpop.permute.xlu1 %670 }
 0x210   :  { %v418_v31 = vpop.f32.mrb[2].mxu1 }
 0x211   :  { %v498_v32 = vsel %vm2425_vm3, -inf, %v418_v31  ;;  %v1942_v33 = vpop.f32.mrb[3].mxu1 }
 0x212   :  { %v500_v34 = vsel %vm345_vm2, %v498_v32, -inf }
 0x213   :  { %501 = vmax.xlane.f32.xlu0 %v500_v34 }
 0x214   :  { %v494_v35 = vpop.f32.mrb[4].mxu1 }
 0x215   :  { %v499_v36 = vsel %vm2425_vm3, -inf, %v494_v35  ;;  %v1947_v37 = vpop.f32.mrb[5].mxu1 }
 0x216   :  { %v503_v38 = vsel %vm345_vm2, %v499_v36, -inf }
 0x217   :  { %504 = vmax.xlane.f32.xlu0 %v503_v38 }
 0x22d   :  { %672 = vrot.lane.b32.xlu0 %v2401_v19, %s2257_s4 }
 0x2a0   :  { %v502_v39 = vpop.xlane.xlu0 %501 }
 0x2a1   :  { %v506_v40 = vsub.f32 %v498_v32, %v502_v39 }
 0x2a3   :  { %v508_v41 = vmul.f32 1.442695, %v506_v40 }
 0x2a4   :  { %v505_v42 = vpop.xlane.xlu0 %504 }
 0x2a5   :  { %2076 = vpow2.f32 %v508_v41  ;;  %v507_v44 = vsub.f32 %v499_v36, %v505_v42 }
 0x2a7   :  { %v510_v45 = vmul.f32 1.442695, %v507_v44 }
 0x2a8   :  { %v673_v46 = vpop.permute.xlu0 %672 }
 0x2a9   :  { %2078 = vpow2.f32 %v510_v45  ;;  %1959 = vmatpush3.xpose.msk.msra.mxu0 %vm345_vm2, %v673_v46 }
 0x2aa   :  { %1968 = vmatprep.subr.mxu0 %v2255_v14 }
 0x2ac   :  { %1961 = vmatmul.mubr.msk.f32.vlgmr.msra.gmra.mrb[4].mxu0 %vm345_vm2, %v671_v47 }
 0x2ad   :  { %1970 = vmatprep.mubr.msk.f32.mxu0 %vm2256_vm1, %v2255_v14 }
 0x2af   :  { %v2077_v48 = vpop.eup %2076 }
 0x2b0   :  { %v512_v49 = vsel %vm345_vm2, %v2077_v48, 0.0 }
 0x2b1   :  { %513 = vadd.xlane.f32.xlu1 %v512_v49 }
 0x2b3   :  { %v2079_v50 = vpop.eup %2078 }
 0x2b4   :  { %v515_v51 = vsel %vm345_vm2, %v2079_v50, 0.0 }
 0x2b5   :  { %516 = vadd.xlane.f32.xlu1 %v515_v51 }
 0x2c6   :  { %748 = vrot.lane.b32.xlu1 %v2414_v20, %s2257_s4 }
 0x33e   :  { %v514_v54 = vpop.xlane.xlu1 %513 }
 0x33f   :  { %2080 = vrcp.f32 %v514_v54 }
 0x342   :  { %v517_v55 = vpop.xlane.xlu1 %516 }
 0x343   :  { %2082 = vrcp.f32 %v517_v55 }
 0x346   :  { %v749_v60 = vpop.permute.xlu1 %748 }
 0x349   :  { %v2081_v56 = vpop.eup %2080 }
 0x34a   :  { %v520_v57 = vmul.f32 %v2081_v56, %v2077_v48 }
 0x34c   :  { %1951 = vmatmul.mubr.msk.f32.vlgmr.msra.gmra.mrb[6].mxu1 %vm345_vm2, %v520_v57 }
 0x34d   :  { %v2083_v58 = vpop.eup %2082  ;;  %1954 = vmatpush3.msra.mxu1 %v2446_v52  ;;  %1955 = vmatprep.mubr.msk.f32.mxu1 %vm2256_vm1, %v2255_v14 }
 0x34e   :  { %v521_v59 = vmul.f32 %v2083_v58, %v2079_v50  ;;  %1963 = vmatprep.subr.mxu1 %v2255_v14 }
 0x350   :  { %1956 = vmatmul.mubr.msk.f32.vlgmr.msra.gmra.mrb[8].mxu1 %vm345_vm2, %v521_v59 }
 0x351   :  { %1965 = vmatprep.mubr.msk.f32.mxu1 %vm2256_vm1, %v2255_v14 }
 0x354   :  { %1964 = vmatpush3.xpose.msk.msra.mxu1 %vm345_vm2, %v751_v43 }
 0x355   :  { %1973 = vmatprep.subr.mxu1 %v2255_v14 }
 0x357   :  { %1966 = vmatmul.mubr.msk.f32.vlgmr.msra.gmra.mrb[10].mxu1 %vm345_vm2, %v749_v60 }
 0x358   :  { %1975 = vmatprep.mubr.msk.f32.mxu1 %vm2256_vm1, %v2255_v14 }
 0x37f   :  { %v744_v61 = vpop.f32.mrb[4].mxu0 }
 0x380   :  { %v826_v62 = vsel %vm2425_vm3, -inf, %v744_v61  ;;  %v1962_v63 = vpop.f32.mrb[5].mxu0 }
 0x381   :  { %v828_v0 = vsel %vm345_vm2, %v826_v62, -inf }
 0x382   :  { %829 = vmax.xlane.f32.xlu0 %v828_v0 }
 0x40f   :  { %v830_v1 = vpop.xlane.xlu0 %829 }
 0x410   :  { %v834_v2 = vsub.f32 %v826_v62, %v830_v1 }
 0x412   :  { %v836_v3 = vmul.f32 1.442695, %v834_v2 }
 0x414   :  { %2084 = vpow2.f32 %v836_v3 }
 0x41e   :  { %v2085_v4 = vpop.eup %2084 }
 0x41f   :  { %v591_v5 = vpop.f32.mrb[6].mxu1  ;;  %v840_v6 = vsel %vm345_vm2, %v2085_v4, 0.0 }
 0x420   :  { %668 = vst.msk [vmem:[#allocation2] sm:$0xff] %vm345_vm2, %v591_v5  ;;  %841 = vadd.xlane.f32.xlu0 %v840_v6  ;;  %v1952_v7 = vpop.f32.mrb[7].mxu1 }
 0x423   :  { %v664_v8 = vpop.f32.mrb[8].mxu1 }
 0x424   :  { %669 = vst.msk [vmem:[#allocation2 + $0x8] sm:$0xff] %vm345_vm2, %v664_v8  ;;  %v1957_v9 = vpop.f32.mrb[9].mxu1 }
 0x42a   :  { %v822_v10 = vpop.f32.mrb[10].mxu1 }
 0x42b   :  { %v827_v11 = vsel %vm2425_vm3, -inf, %v822_v10  ;;  %v1967_v12 = vpop.f32.mrb[11].mxu1 }
 0x42c   :  { %v831_v13 = vsel %vm345_vm2, %v827_v11, -inf }
 0x42d   :  { %832 = vmax.xlane.f32.xlu1 %v831_v13 }
 0x436   :  { %851 = vrot.lane.b32.xlu0 %v2448_v53, %s2257_s4 }
 0x43e   :  { %928 = vrot.lane.b32.xlu1 %v2446_v52, %s2257_s4 }
 0x442   :  { %1017 = vrot.lane.b32.xlu1 %v2401_v19, %s2258_s11 }
 0x446   :  { %1095 = vrot.lane.b32.xlu1 %v2395_v16, %s2258_s11 }
 0x44a   :  { %1093 = vrot.lane.b32.xlu1 %v2414_v20, %s2258_s11 }
 0x4ad   :  { %v842_v15 = vpop.xlane.xlu0 %841 }
 0x4ae   :  { %2086 = vrcp.f32 %v842_v15 }
 0x4b1   :  { %v852_v17 = vpop.permute.xlu0 %851 }
 0x4b2   :  { %1969 = vmatpush3.msra.mxu0 %v852_v17 }
 0x4b3   :  { %1978 = vmatprep.subr.mxu0 %v2255_v14 }
 0x4b8   :  { %v2087_v21 = vpop.eup %2086 }
 0x4b9   :  { %v848_v22 = vmul.f32 %v2087_v21, %v2085_v4 }
 0x4ba   :  { %v833_v23 = vpop.xlane.xlu1 %832 }
 0x4bb   :  { %v835_v24 = vsub.f32 %v827_v11, %v833_v23  ;;  %1971 = vmatmul.mubr.msk.f32.vlgmr.msra.gmra.mrb[6].mxu0 %vm345_vm2, %v848_v22 }
 0x4bc   :  { %1980 = vmatprep.mubr.msk.f32.mxu0 %vm2256_vm1, %v2255_v14 }
 0x4bd   :  { %v838_v25 = vmul.f32 1.442695, %v835_v24 }
 0x4be   :  { %v929_v26 = vpop.permute.xlu1 %928 }
 0x4bf   :  { %2088 = vpow2.f32 %v838_v25  ;;  %1974 = vmatpush3.msra.mxu1 %v929_v26 }
 0x4c0   :  { %1983 = vmatprep.subr.mxu1 %v2255_v14 }
 0x4c2   :  { %v1018_v27 = vpop.permute.xlu1 %1017 }
 0x4c3   :  { %1979 = vmatpush3.xpose.msk.msra.mxu0 %vm345_vm2, %v1018_v27 }
 0x4c4   :  { %1988 = vmatprep.subr.mxu0 %v2255_v14 }
 0x4c6   :  { %v1096_v34 = vpop.permute.xlu1 %1095 }
 0x4c9   :  { %v2089_v28 = vpop.eup %2088 }
 0x4ca   :  { %v843_v29 = vsel %vm345_vm2, %v2089_v28, 0.0  ;;  %v1094_v36 = vpop.permute.xlu1 %1093 }
 0x4cb   :  { %844 = vadd.xlane.f32.xlu0 %v843_v29 }
 0x4e1   :  { %1015 = vrot.lane.b32.xlu0 %v2399_v18, %s2258_s11 }
 0x558   :  { %v845_v31 = vpop.xlane.xlu0 %844 }
 0x559   :  { %2090 = vrcp.f32 %v845_v31 }
 0x55c   :  { %v1016_v32 = vpop.permute.xlu0 %1015 }
 0x55d   :  { %1981 = vmatmul.mubr.msk.f32.vlgmr.msra.gmra.mrb[8].mxu0 %vm345_vm2, %v1016_v32 }
 0x55e   :  { %1990 = vmatprep.mubr.msk.f32.mxu0 %vm2256_vm1, %v2255_v14 }
 0x563   :  { %v2091_v33 = vpop.eup %2090 }
 0x564   :  { %v849_v35 = vmul.f32 %v2091_v33, %v2089_v28 }
 0x566   :  { %1976 = vmatmul.mubr.msk.f32.vlgmr.msra.gmra.mrb[12].mxu1 %vm345_vm2, %v849_v35 }
 0x567   :  { %1984 = vmatpush3.xpose.msk.msra.mxu1 %vm345_vm2, %v1096_v34  ;;  %1985 = vmatprep.mubr.msk.f32.mxu1 %vm2256_vm1, %v2255_v14 }
 0x568   :  { %1993 = vmatprep.subr.mxu1 %v2255_v14 }
 0x56a   :  { %1986 = vmatmul.mubr.msk.f32.vlgmr.msra.gmra.mrb[14].mxu1 %vm345_vm2, %v1094_v36 }
 0x56b   :  { %1995 = vmatprep.mubr.msk.f32.mxu1 %vm2256_vm1, %v2255_v14 }
 0x58e   :  { %v2505_v37 = vpop.f32.mrb[6].mxu0 }
 0x58f   :  { %v1972_v38 = vpop.f32.mrb[7].mxu0 }
 0x630   :  { %v1089_v39 = vpop.f32.mrb[8].mxu0 }
 0x631   :  { %v1171_v40 = vsel %vm2425_vm3, -inf, %v1089_v39  ;;  %v1982_v41 = vpop.f32.mrb[9].mxu0 }
 0x632   :  { %v1173_v42 = vsel %vm345_vm2, %v1171_v40, -inf }
 0x633   :  { %1174 = vmax.xlane.f32.xlu0 %v1173_v42  ;;  %v1703_v42 = vld [vmem:[#allocation11] sm:$0xff] }
 0x639   :  { %v2510_v43 = vpop.f32.mrb[12].mxu1 }
 0x63a   :  { %v1977_v44 = vpop.f32.mrb[13].mxu1 }
 0x63b   :  { %v1705_v44 = vld [vmem:[#allocation11 + $0x10] sm:$0xff] }
 0x63d   :  { %v1167_v45 = vpop.f32.mrb[14].mxu1 }
 0x63e   :  { %v1172_v46 = vsel %vm2425_vm3, -inf, %v1167_v45  ;;  %v1987_v47 = vpop.f32.mrb[15].mxu1  ;;  %v1706_v45 = vld [vmem:[#allocation11 + $0x18] sm:$0xff] }
 0x63f   :  { %v1176_v48 = vsel %vm345_vm2, %v1172_v46, -inf }
 0x640   :  { %1177 = vmax.xlane.f32.xlu1 %v1176_v48 }
 0x651   :  { %1271 = vrot.lane.b32.xlu1 %v2446_v52, %s2258_s11 }
 0x655   :  { %1360 = vrot.lane.b32.xlu1 %v2401_v19, %s2259_s3 }
 0x659   :  { %1438 = vrot.lane.b32.xlu1 %v2395_v16, %s2259_s3 }
 0x65d   :  { %1436 = vrot.lane.b32.xlu1 %v2414_v20, %s2259_s3 }
 0x6c0   :  { %v1175_v49 = vpop.xlane.xlu0 %1174 }
 0x6c1   :  { %v1179_v50 = vsub.f32 %v1171_v40, %v1175_v49 }
 0x6c3   :  { %v1181_v51 = vmul.f32 1.442695, %v1179_v50 }
 0x6c5   :  { %2092 = vpow2.f32 %v1181_v51 }
 0x6cd   :  { %v1178_v54 = vpop.xlane.xlu1 %1177 }
 0x6ce   :  { %v1180_v16 = vsub.f32 %v1172_v46, %v1178_v54  ;;  %v2057_v46 = vpack.c.bf16 %v1706_v45, %v1705_v44 }
 0x6cf   :  { %v2093_v55 = vpop.eup %2092 }
 0x6d0   :  { %v1185_v56 = vsel %vm345_vm2, %v2093_v55, 0.0  ;;  %v1183_v19 = vmul.f32 1.442695, %v1180_v16 }
 0x6d1   :  { %1186 = vadd.xlane.f32.xlu0 %v1185_v56  ;;  %v1272_v57 = vpop.permute.xlu1 %1271 }
 0x6d2   :  { %1994 = vmatpush3.msra.mxu1 %v1272_v57  ;;  %2094 = vpow2.f32 %v1183_v19  ;;  %v1846_v57 = vld [vmem:[%s2594_s5] ss:$0 sm:$0xff] }
 0x6d3   :  { %2003 = vmatprep.subr.mxu1 %v2255_v14 }
 0x6d5   :  { %v1361_v63 = vpop.permute.xlu1 %1360 }
 0x6d9   :  { %v1439_v2 = vpop.permute.xlu1 %1438 }
 0x6dc   :  { %v2095_v20 = vpop.eup %2094 }
 0x6dd   :  { %v1188_v58 = vsel %vm345_vm2, %v2095_v20, 0.0  ;;  %v1437_v4 = vpop.permute.xlu1 %1436 }
 0x6e7   :  { %1195 = vrot.lane.b32.xlu0 %v2448_v53, %s2258_s11 }
 0x706   :  { %1189 = vadd.xlane.f32.xlu0 %v1188_v58 }
 0x71c   :  { %1358 = vrot.lane.b32.xlu0 %v2399_v18, %s2259_s3 }
 0x75e   :  { %v1187_v59 = vpop.xlane.xlu0 %1186 }
 0x75f   :  { %2096 = vrcp.f32 %v1187_v59 }
 0x762   :  { %v1196_v60 = vpop.permute.xlu0 %1195 }
 0x763   :  { %1989 = vmatpush3.msra.mxu0 %v1196_v60 }
 0x764   :  { %1998 = vmatprep.subr.mxu0 %v2255_v14 }
 0x769   :  { %v2097_v61 = vpop.eup %2096 }
 0x76a   :  { %v1193_v62 = vmul.f32 %v2097_v61, %v2093_v55 }
 0x76c   :  { %1991 = vmatmul.mubr.msk.f32.vlgmr.msra.gmra.mrb[10].mxu0 %vm345_vm2, %v1193_v62 }
 0x76d   :  { %1999 = vmatpush3.xpose.msk.msra.mxu0 %vm345_vm2, %v1361_v63  ;;  %2000 = vmatprep.mubr.msk.f32.mxu0 %vm2256_vm1, %v2255_v14 }
 0x76e   :  { %2008 = vmatprep.subr.mxu0 %v2255_v14 }
 0x793   :  { %v1190_v0 = vpop.xlane.xlu0 %1189 }
 0x794   :  { %2098 = vrcp.f32 %v1190_v0 }
 0x797   :  { %v1359_v18 = vpop.permute.xlu0 %1358 }
 0x798   :  { %2001 = vmatmul.mubr.msk.f32.vlgmr.msra.gmra.mrb[12].mxu0 %vm345_vm2, %v1359_v18 }
 0x799   :  { %2010 = vmatprep.mubr.msk.f32.mxu0 %vm2256_vm1, %v2255_v14 }
 0x79e   :  { %v2099_v1 = vpop.eup %2098 }
 0x79f   :  { %v1194_v3 = vmul.f32 %v2099_v1, %v2095_v20 }
 0x7a1   :  { %1996 = vmatmul.mubr.msk.f32.vlgmr.msra.gmra.mrb[16].mxu1 %vm345_vm2, %v1194_v3 }
 0x7a2   :  { %2004 = vmatpush3.xpose.msk.msra.mxu1 %vm345_vm2, %v1439_v2  ;;  %2005 = vmatprep.mubr.msk.f32.mxu1 %vm2256_vm1, %v2255_v14 }
 0x7a3   :  { %2013 = vmatprep.subr.mxu1 %v2255_v14 }
 0x7a5   :  { %2006 = vmatmul.mubr.msk.f32.vlgmr.msra.gmra.mrb[18].mxu1 %vm345_vm2, %v1437_v4 }
 0x7a6   :  { %2015 = vmatprep.mubr.msk.f32.mxu1 %vm2256_vm1, %v2255_v14 }
 0x83f   :  { %v1267_v5 = vpop.f32.mrb[10].mxu0 }
 0x840   :  { %v1992_v6 = vpop.f32.mrb[11].mxu0 }
 0x86b   :  { %v1432_v7 = vpop.f32.mrb[12].mxu0 }
 0x86c   :  { %v1514_v8 = vsel %vm2425_vm3, -inf, %v1432_v7  ;;  %v2002_v9 = vpop.f32.mrb[13].mxu0 }
 0x86d   :  { %v1516_v10 = vsel %vm345_vm2, %v1514_v8, -inf }
 0x86e   :  { %1517 = vmax.xlane.f32.xlu0 %v1516_v10 }
 0x874   :  { %v1343_v11 = vpop.f32.mrb[16].mxu1 }
 0x875   :  { %v1997_v12 = vpop.f32.mrb[17].mxu1 }
 0x878   :  { %v1510_v13 = vpop.f32.mrb[18].mxu1 }
 0x879   :  { %v1515_v15 = vsel %vm2425_vm3, -inf, %v1510_v13  ;;  %v2007_v17 = vpop.f32.mrb[19].mxu1 }
 0x87a   :  { %v1519_v21 = vsel %vm345_vm2, %v1515_v15, -inf }
 0x87b   :  { %1520 = vmax.xlane.f32.xlu1 %v1519_v21 }
 0x88c   :  { %1614 = vrot.lane.b32.xlu1 %v2446_v52, %s2259_s3 }
 0x890   :  { %1006 = vrot.lane.b32.xlu1 %v2505_v37, %s2251_s10 }
 0x894   :  { %1008 = vrot.lane.b32.xlu1 %v2510_v43, %s2251_s10 }
 0x898   :  { %1351 = vrot.lane.b32.xlu1 %v1343_v11, %s2260_s24 }
 0x8fb   :  { %v1518_v14 = vpop.xlane.xlu0 %1517 }
 0x8fc   :  { %v1522_v22 = vsub.f32 %v1514_v8, %v1518_v14 }
 0x8fe   :  { %v1524_v23 = vmul.f32 1.442695, %v1522_v22 }
 0x900   :  { %2100 = vpow2.f32 %v1524_v23 }
 0x908   :  { %v1521_v30 = vpop.xlane.xlu1 %1520 }
 0x909   :  { %v1523_v24 = vsub.f32 %v1515_v15, %v1521_v30 }
 0x90a   :  { %v2101_v25 = vpop.eup %2100 }
 0x90b   :  { %v1526_v26 = vmul.f32 1.442695, %v1523_v24  ;;  %v1528_v27 = vsel %vm345_vm2, %v2101_v25, 0.0 }
 0x90c   :  { %1529 = vadd.xlane.f32.xlu0 %v1528_v27  ;;  %v1615_v52 = vpop.permute.xlu1 %1614 }
 0x90d   :  { %2102 = vpow2.f32 %v1526_v26  ;;  %2014 = vmatpush3.msra.mxu1 %v1615_v52 }
 0x910   :  { %v1007_v28 = vpop.permute.xlu1 %1006 }
 0x911   :  { %1013 = vst.msk [vmem:[#allocation2] sm:$0xff] %vm1012_vm4, %v1007_v28 }
 0x914   :  { %v1009_v29 = vpop.permute.xlu1 %1008 }
 0x915   :  { %1014 = vst.msk [vmem:[#allocation2 + $0x8] sm:$0xff] %vm1012_vm4, %v1009_v29 }
 0x917   :  { %v2103_v31 = vpop.eup %2102 }
 0x918   :  { %v1352_v32 = vpop.permute.xlu1 %1351  ;;  %v1531_v33 = vsel %vm345_vm2, %v2103_v31, 0.0 }
 0x919   :  { %1357 = vst.msk [vmem:[#allocation2 + $0x8] sm:$0xff] %vm1355_vm5, %v1352_v32  ;;  %1532 = vadd.xlane.f32.xlu0 %v1531_v33 }
 0x92f   :  { %1538 = vrot.lane.b32.xlu0 %v2448_v53, %s2259_s3  ;;  %v1704_v53 = vld [vmem:[#allocation11 + $0x8] sm:$0xff] }
 0x930   :  { %v2053_v43 = vpack.c.bf16 %v1704_v53, %v1703_v42 }
 0x933   :  { %1349 = vrot.lane.b32.xlu0 %v1267_v5, %s2260_s24 }
 0x999   :  { %v1530_v34 = vpop.xlane.xlu0 %1529 }
 0x99a   :  { %2104 = vrcp.f32 %v1530_v34 }
 0x9a4   :  { %v2105_v36 = vpop.eup %2104 }
 0x9a5   :  { %v1536_v37 = vmul.f32 %v2105_v36, %v2101_v25 }
 0x9a6   :  { %v1533_v35 = vpop.xlane.xlu0 %1532 }
 0x9a7   :  { %2106 = vrcp.f32 %v1533_v35 }
 0x9aa   :  { %v1539_v38 = vpop.permute.xlu0 %1538 }
 0x9ab   :  { %2009 = vmatpush3.msra.mxu0 %v1539_v38 }
 0x9ac   :  { %2011 = vmatmul.mubr.msk.f32.vlgmr.msra.gmra.mrb[14].mxu0 %vm345_vm2, %v1536_v37  ;;  %2054 = vmatprep.subr.bf16.mxu0 %v2053_v43 }
 0x9ad   :  { %2056 = vmatpush3.bf16.msra.mxu0 %v2053_v43 }
 0x9ae   :  { %v1350_v39 = vpop.permute.xlu0 %1349  ;;  %2058 = vmatprep.subr.bf16.mxu0 %v2057_v46 }
 0x9af   :  { %1356 = vst.msk [vmem:[#allocation2] sm:$0xff] %vm1355_vm5, %v1350_v39 }
 0x9b1   :  { %v2107_v40 = vpop.eup %2106  ;;  %2060 = vmatpush3.bf16.msra.mxu0 %v2057_v46 }
 0x9b2   :  { %v1537_v41 = vmul.f32 %v2107_v40, %v2103_v31 }
 0x9b4   :  { %2016 = vmatmul.mubr.msk.f32.vlgmr.msra.gmra.mrb[20].mxu1 %vm345_vm2, %v1537_v41 }
 0xa7f   :  { %v1610_v47 = vpop.f32.mrb[14].mxu0 }
 0xa80   :  { %1692 = vrot.lane.b32.xlu0 %v1610_v47, %s2261_s12  ;;  %v2012_v48 = vpop.f32.mrb[15].mxu0 }
 0xa87   :  { %v1686_v49 = vpop.f32.mrb[20].mxu1 }
 0xa88   :  { %1694 = vrot.lane.b32.xlu1 %v1686_v49, %s2261_s12  ;;  %v2017_v50 = vpop.f32.mrb[21].mxu1 }
 0xaf2   :  { %v1693_v51 = vpop.permute.xlu0 %1692 }
 0xaf3   :  { %1699 = vst.msk [vmem:[#allocation2] sm:$0xff] %vm1698_vm6, %v1693_v51 }
 0xafa   :  { %v1695_v54 = vpop.permute.xlu1 %1694  ;;  %v1701_v55 = vld [vmem:[#allocation2] sm:$0xff] }
 0xafb   :  { %1700 = vst.msk [vmem:[#allocation2 + $0x8] sm:$0xff] %vm1698_vm6, %v1695_v54  ;;  %2026 = vmatprep.mubr.msk.f32.mxu0 %vm98_vm0, %v1701_v55 }
 0xb02   :  { %v1702_v56 = vld [vmem:[#allocation2 + $0x8] sm:$0xff] }
 0xb03   :  { %2027 = vmatmul.mubr.msk.f32.vlgmr.msra.gmra.mrb[16].mxu0 %vm98_vm0, %v1702_v56 }
 0xbd6   :  { %v2028_v16 = vpop.f32.mrb[16].mxu0 }
 0xbd7   :  { %v1792_v19 = vadd.f32 %v2028_v16, %v1846_v57  ;;  %v1786_v20 = vpop.f32.mrb[17].mxu0 }
 0xbd8   :  { %v1787_v58 = vadd.f32 %v1846_v57, %v1786_v20 }
 0xbd9   :  { %1796 = vst.msk [vmem:[#allocation12 + $0x8] sm:$0xff] %vm98_vm0, %v1792_v19 }
 0xbda   :  { %1795 = vst.msk [vmem:[#allocation12] sm:$0xff] %vm98_vm0, %v1787_v58 }
 0xbdb   :  { %2229 = shalt.err (!%p2226_p2)
}
 0xbdc   :  { %s2230_s19 = scalar_lea.hbm %s2595_s6, 256 }
 0xbdd   :  { %p2231_p3 = scmp.ne.s32.totalorder %s2595_s6, %s2230_s19  ;;  %p2234_p4 = scmp.lt.u32.totalorder %s2230_s19, %s2595_s6 }
 0xbdf   :  { %p2236_p5 = pnand %p2234_p4, %p2231_p3 }
 0xbe1   :  { %2239 = shalt.err (!%p2236_p5)
}
 0xbe2   :  { %1808 = dma.vmem_to_hbm [thread:$0]  %s1803_s16, 256, %s2595_s6, [#allocation5], %s2250_s9, %s2250_s9, %s2251_s10  }
 0xbe3   :  { %2246 = dma.done.wait [#allocation5], 256  }
 0xbe4   :  { %2247 = vsyncadd [#allocation5], 4294967040 }
 0xbe5   :  { %1812 = vsyncpa [#allocation4], 1 }
 0xbe6   :  { %1813 = vsyncpa [#allocation7], 1 }
 0xbe7   :  { %1814 = vsyncpa [#allocation10], 1 }
 0xbe8   :  { %1815 = vsyncpa [#allocation5], 1 }

</bundles_post_ra>
